<compile_context>
chip_gen: v5e
topology: v5e:2x2
jax: 0.10.0
libtpu: 0.0.40
codegen_flags: <defaults>
</compile_context>

<pallas_src>
import functools
import math

import jax
import jax.numpy as jnp
from jax.experimental import pallas as pl
from jax.experimental.pallas import tpu as pltpu


# ----------------------------------------------------------------------------
# helpers
# ----------------------------------------------------------------------------
def _tile(dim, targets):
    """Largest target tile that evenly divides `dim`; fall back to full dim."""
    for t in targets:
        if t <= dim and dim % t == 0:
            return t
    return dim


def _round_up(x, m):
    return ((x + m - 1) // m) * m


def _mosaic_params(sem, est_bytes):
    # raise the scoped-VMEM limit to cover the chosen tiles (cap < v7x physical)
    limit = int(min(max(2 * est_bytes, 32 * 1024 * 1024), 48 * 1024 * 1024))
    return pltpu.CompilerParams(dimension_semantics=sem, vmem_limit_bytes=limit)


def _to_bf16(v):
    return v if v.dtype == jnp.bfloat16 else v.astype(jnp.bfloat16)


def _gelu(y):
    # TODO(synk): HF BERT default gelu is erf-based; tanh approximation used.
    c = math.sqrt(2.0 / math.pi)
    return 0.5 * y * (1.0 + jnp.tanh(c * (y + 0.044715 * (y * y * y))))


_TM = (1024, 512, 256, 128, 64, 32, 16, 8)
_TN = (1024, 768, 512, 384, 256, 128)
_TK = (512, 384, 256, 128)


# ----------------------------------------------------------------------------
# Tiled dense:  y = act(x @ W + b)          (bf16 MXU, fp32 VMEM accumulator)
# ----------------------------------------------------------------------------
def _matmul_kernel(x_ref, w_ref, b_ref, o_ref, acc_ref, *, act):
    @pl.when(pl.program_id(2) == 0)
    def _():
        acc_ref[...] = jnp.zeros_like(acc_ref)

    acc_ref[...] += jnp.dot(_to_bf16(x_ref[...]), _to_bf16(w_ref[...]),
                            preferred_element_type=jnp.float32)

    @pl.when(pl.program_id(2) == pl.num_programs(2) - 1)
    def _():
        y = acc_ref[...] + b_ref[...].astype(jnp.float32)
        if act == "gelu":
            y = _gelu(y)
        o_ref[...] = y.astype(o_ref.dtype)


def dense(x, w, b, act="none", out_dtype=jnp.bfloat16):
    """x: [M, K] (bf16), w: [K, N] (bf16), b: [N] (fp32)."""
    M, K = x.shape
    _, N = w.shape
    tm = _tile(M, _TM)
    tn = _tile(N, _TN)
    tk = _tile(K, _TK)

    est = (2 * tm * tk * x.dtype.itemsize
           + 2 * tk * tn * w.dtype.itemsize
           + 2 * tn * 4
           + 2 * tm * tn * jnp.dtype(out_dtype).itemsize
           + tm * tn * 4)

    return pl.pallas_call(
        functools.partial(_matmul_kernel, act=act),
        grid=(M // tm, N // tn, K // tk),
        in_specs=[
            pl.BlockSpec((tm, tk), lambda i, j, k: (i, k)),
            pl.BlockSpec((tk, tn), lambda i, j, k: (k, j)),
            pl.BlockSpec((1, tn), lambda i, j, k: (0, j)),
        ],
        out_specs=pl.BlockSpec((tm, tn), lambda i, j, k: (i, j)),
        out_shape=jax.ShapeDtypeStruct((M, N), out_dtype),
        scratch_shapes=[pltpu.VMEM((tm, tn), jnp.float32)],
        compiler_params=_mosaic_params(("parallel", "parallel", "arbitrary"), est),
    )(x, w, b.reshape(1, N))


# ----------------------------------------------------------------------------
# Dense fused with bias + (optional gelu) + (optional residual) + LayerNorm.
# Requires the full output row resident (tn == N) so LN stats are exact.
# ----------------------------------------------------------------------------
def _matmul_ln_kernel(x_ref, w_ref, b_ref, *rest, act, has_res):
    if has_res:
        r_ref, g_ref, bt_ref, o_ref, acc_ref = rest
    else:
        g_ref, bt_ref, o_ref, acc_ref = rest

    @pl.when(pl.program_id(1) == 0)
    def _():
        acc_ref[...] = jnp.zeros_like(acc_ref)

    acc_ref[...] += jnp.dot(_to_bf16(x_ref[...]), _to_bf16(w_ref[...]),
                            preferred_element_type=jnp.float32)

    @pl.when(pl.program_id(1) == pl.num_programs(1) - 1)
    def _():
        y = acc_ref[...] + b_ref[...].astype(jnp.float32)
        if act == "gelu":
            y = _gelu(y)
        if has_res:
            y = y + r_ref[...].astype(jnp.float32)
        mu = jnp.mean(y, axis=-1, keepdims=True)
        yc = y - mu
        var = jnp.mean(yc * yc, axis=-1, keepdims=True)
        out = (yc * jax.lax.rsqrt(var + 1e-12) * g_ref[...].astype(jnp.float32)
               + bt_ref[...].astype(jnp.float32))
        o_ref[...] = out.astype(o_ref.dtype)


def dense_ln(x, w, b, gamma, beta, residual=None, act="none",
             out_dtype=jnp.bfloat16):
    """LayerNorm(act(x @ w + b) [+ residual]);  x:[M,K], w:[K,N]."""
    M, K = x.shape
    _, N = w.shape
    tm = _tile(M, _TM)
    tk = _tile(K, _TK)
    has_res = residual is not None

    row_spec = pl.BlockSpec((tm, N), lambda i, k: (i, 0))
    vec_spec = pl.BlockSpec((1, N), lambda i, k: (0, 0))

    in_specs = [pl.BlockSpec((tm, tk), lambda i, k: (i, k)),
                pl.BlockSpec((tk, N), lambda i, k: (k, 0)),
                vec_spec]
    args = [x, w, b.reshape(1, N)]
    if has_res:
        in_specs.append(row_spec)
        args.append(residual)
    in_specs += [vec_spec, vec_spec]
    args += [gamma.reshape(1, N), beta.reshape(1, N)]

    est = (2 * tm * tk * x.dtype.itemsize
           + 2 * tk * N * w.dtype.itemsize
           + (2 * tm * N * residual.dtype.itemsize if has_res else 0)
           + 6 * N * 4
           + 2 * tm * N * jnp.dtype(out_dtype).itemsize
           + tm * N * 4)

    return pl.pallas_call(
        functools.partial(_matmul_ln_kernel, act=act, has_res=has_res),
        grid=(M // tm, K // tk),
        in_specs=in_specs,
        out_specs=row_spec,
        out_shape=jax.ShapeDtypeStruct((M, N), out_dtype),
        scratch_shapes=[pltpu.VMEM((tm, N), jnp.float32)],
        compiler_params=_mosaic_params(("parallel", "arbitrary"), est),
    )(*args)


# ----------------------------------------------------------------------------
# Embedding LayerNorm fused with the post-LN language-embedding add.
# ----------------------------------------------------------------------------
def _ln_add_kernel(x_ref, a_ref, g_ref, b_ref, o_ref):
    x = x_ref[...].astype(jnp.float32)
    mu = jnp.mean(x, axis=-1, keepdims=True)
    xc = x - mu
    var = jnp.mean(xc * xc, axis=-1, keepdims=True)
    y = xc * jax.lax.rsqrt(var + 1e-12) * g_ref[...] + b_ref[...]
    y = y + a_ref[...].astype(jnp.float32)
    o_ref[...] = y.astype(o_ref.dtype)


def layernorm_add(x, add, g, b, out_dtype=jnp.bfloat16):
    R, H = x.shape
    tm = _tile(R, _TM)
    row_spec = pl.BlockSpec((tm, H), lambda i: (i, 0))
    vec_spec = pl.BlockSpec((1, H), lambda i: (0, 0))
    return pl.pallas_call(
        _ln_add_kernel,
        grid=(R // tm,),
        in_specs=[row_spec, row_spec, vec_spec, vec_spec],
        out_specs=row_spec,
        out_shape=jax.ShapeDtypeStruct((R, H), out_dtype),
        compiler_params=pltpu.CompilerParams(dimension_semantics=("parallel",)),
    )(x, add, g.reshape(1, H), b.reshape(1, H))


# ----------------------------------------------------------------------------
# Attention: reads lane-dense head groups directly from packed QKV [B, S, 3H].
# ----------------------------------------------------------------------------
def _attn_body(q_all, k_all, v_all, bias, o_ref, *, scale, heads, hd):
    # q_all/k_all/v_all: (S, heads*hd) bf16;  bias: (1, S) fp32 additive mask
    for h in range(heads):
        sl = slice(h * hd, (h + 1) * hd)
        q, k, v = q_all[:, sl], k_all[:, sl], v_all[:, sl]
        # transposed-operand matmul: contract the head dim of q and k directly
        s = jax.lax.dot_general(q, k, (((1,), (1,)), ((), ())),
                                preferred_element_type=jnp.float32)
        s = s * scale + bias
        s = s - jnp.max(s, axis=-1, keepdims=True)
        p = jnp.exp(s)
        inv = pl.reciprocal(jnp.sum(p, axis=-1, keepdims=True), approx=True)
        ctx = jnp.dot((p * inv).astype(jnp.bfloat16), v,
                      preferred_element_type=jnp.float32)
        # write straight into the lane-dense output block (no concatenate)
        o_ref[0, :, sl] = ctx.astype(o_ref.dtype)


def _attn_kernel_grouped(q_ref, k_ref, v_ref, bias_ref, o_ref, *, scale, hpb, hd):
    _attn_body(_to_bf16(q_ref[0]), _to_bf16(k_ref[0]), _to_bf16(v_ref[0]),
               bias_ref[0], o_ref, scale=scale, heads=hpb, hd=hd)


def _attn_kernel_full(qkv_ref, bias_ref, o_ref, *, scale, nh, hd, H):
    qkv = _to_bf16(qkv_ref[0])
    _attn_body(qkv[:, :H], qkv[:, H:2 * H], qkv[:, 2 * H:],
               bias_ref[0], o_ref, scale=scale, heads=nh, hd=hd)


def attention(qkv, attn_bias, num_heads, scale, H):
    """qkv: [B, S, 3H] bf16 (packed Q|K|V). attn_bias: [B,1,S] fp32. -> [B,S,H]."""
    # TODO(synk): for S >~ 1K add KV tiling (online softmax) so the SxS fp32
    # score/prob temporaries stay within v7x's smaller VMEM.
    B, S, _ = qkv.shape
    hd = H // num_heads
    # lane-dense head group: smallest head count whose width is a multiple of 128
    hpb = 0
    for p in range(1, num_heads + 1):
        if num_heads % p == 0 and (p * hd) % 128 == 0:
            hpb = p
            break

    out_shape = jax.ShapeDtypeStruct((B, S, H), jnp.bfloat16)

    if hpb:
        ng = num_heads // hpb
        C = hpb * hd

        def blk(off):
            return pl.BlockSpec((1, S, C), lambda b, g: (b, 0, off + g))

        return pl.pallas_call(
            functools.partial(_attn_kernel_grouped, scale=scale, hpb=hpb, hd=hd),
            grid=(B, ng),
            in_specs=[blk(0), blk(ng), blk(2 * ng),
                      pl.BlockSpec((1, 1, S), lambda b, g: (b, 0, 0))],
            out_specs=pl.BlockSpec((1, S, C), lambda b, g: (b, 0, g)),
            out_shape=out_shape,
            compiler_params=pltpu.CompilerParams(
                dimension_semantics=("parallel", "parallel")),
        )(qkv, qkv, qkv, attn_bias)

    # fallback (head-group width cannot be 128-aligned): full Q|K|V per batch
    return pl.pallas_call(
        functools.partial(_attn_kernel_full, scale=scale, nh=num_heads, hd=hd, H=H),
        grid=(B,),
        in_specs=[pl.BlockSpec((1, S, 3 * H), lambda b: (b, 0, 0)),
                  pl.BlockSpec((1, 1, S), lambda b: (b, 0, 0))],
        out_specs=pl.BlockSpec((1, S, H), lambda b: (b, 0, 0)),
        out_shape=out_shape,
        compiler_params=pltpu.CompilerParams(dimension_semantics=("parallel",)),
    )(qkv, attn_bias)


# ----------------------------------------------------------------------------
# Parameters (deterministic synthetic init).  Matmul weights stored in bf16.
# ----------------------------------------------------------------------------
def init_params(key, V, H, I, L, nh, max_pos, n_type, n_lang):
    def nrm(k, shape, scale=0.02):
        return scale * jax.random.normal(k, shape, dtype=jnp.float32)

    keys = jax.random.split(key, 8 + L)
    bound = math.sqrt(3.0 / H)
    Vp = _round_up(V, 512 if V >= 512 else 128)
    p = {
        "num_heads": nh,
        "word_emb": nrm(keys[0], (V, H)),
        "pos_emb": nrm(keys[1], (max_pos, H)),
        "type_emb": nrm(keys[2], (n_type, H)),
        "lang_emb": jax.random.uniform(keys[3], (n_lang, H), jnp.float32,
                                       -bound, bound),
        "emb_ln_g": jnp.ones((H,), jnp.float32),
        "emb_ln_b": jnp.zeros((H,), jnp.float32),
        "cls_w": nrm(keys[4], (H, H)).astype(jnp.bfloat16),
        "cls_b": jnp.zeros((H,), jnp.float32),
        "cls_ln_g": jnp.ones((H,), jnp.float32),
        "cls_ln_b": jnp.zeros((H,), jnp.float32),
        "dec_b": jnp.zeros((Vp,), jnp.float32),
        "layers": [],
    }
    # decoder weight tied to word embeddings (HF default), padded to a
    # lane-aligned vocab so the vocab matmul tiles cleanly (padded columns are
    # zero and never gathered by word2bpes).
    dec_w = jnp.zeros((H, Vp), jnp.float32).at[:, :V].set(p["word_emb"].T)
    p["dec_w"] = dec_w.astype(jnp.bfloat16)

    for l in range(L):
        lk = jax.random.split(keys[8 + l], 6)
        wq, wk, wv = nrm(lk[0], (H, H)), nrm(lk[1], (H, H)), nrm(lk[2], (H, H))
        p["layers"].append({
            # single packed [H, 3H] QKV weight: x is streamed once, not 3x
            "wqkv": jnp.concatenate([wq, wk, wv], axis=1).astype(jnp.bfloat16),
            "bqkv": jnp.zeros((3 * H,), jnp.float32),
            "wo": nrm(lk[3], (H, H)).astype(jnp.bfloat16),
            "bo": jnp.zeros((H,), jnp.float32),
            "ln1_g": jnp.ones((H,), jnp.float32), "ln1_b": jnp.zeros((H,), jnp.float32),
            "w1": nrm(lk[4], (H, I)).astype(jnp.bfloat16),
            "b1": jnp.zeros((I,), jnp.float32),
            "w2": nrm(lk[5], (I, H)).astype(jnp.bfloat16),
            "b2": jnp.zeros((H,), jnp.float32),
            "ln2_g": jnp.ones((H,), jnp.float32), "ln2_b": jnp.zeros((H,), jnp.float32),
        })
    return p


# ----------------------------------------------------------------------------
# Forward pass (eval mode of JointBertReverseDict)
# ----------------------------------------------------------------------------
def joint_bert_reverse_dict(params, input_ids, language_ids, word2bpes_t, pad_id):
    B, S = input_ids.shape
    H = params["emb_ln_g"].shape[0]
    nh = params["num_heads"]
    hd = H // nh
    M, W = word2bpes_t.shape                       # max_word_len, num_words

    # type_ids = input.flip(1).cumsum(-1).flip(1).eq(0).long()          (glue)
    rev_cs = jnp.cumsum(input_ids[:, ::-1], axis=-1)[:, ::-1]
    type_ids = (rev_cs == 0).astype(jnp.int32)
    # HF extended attention mask, precomputed once as an additive bias
    attn_bias = jnp.where(input_ids != pad_id, 0.0, -10000.0)
    attn_bias = attn_bias.astype(jnp.float32).reshape(B, 1, S)

    # BERT embeddings (gathers in XLA) -> LayerNorm fused with the post-LN
    # language-embedding add (LMBertModel adds language AFTER embeddings())
    pos_ids = jnp.arange(S)
    emb = (params["word_emb"][input_ids]
           + params["pos_emb"][pos_ids][None, :, :]
           + params["type_emb"][type_ids])
    lang = params["lang_emb"][language_ids]
    x = layernorm_add(emb.reshape(B * S, H), lang.reshape(B * S, H),
                      params["emb_ln_g"], params["emb_ln_b"])          # bf16

    scale = 1.0 / math.sqrt(hd)

    for layer in params["layers"]:
        # fused QKV projection: one matmul with a packed [H, 3H] weight
        qkv = dense(x, layer["wqkv"], layer["bqkv"])            # [B*S, 3H] bf16
        ctx = attention(qkv.reshape(B, S, 3 * H), attn_bias, nh, scale, H)
        # attention output projection fused with residual add + LayerNorm
        x = dense_ln(ctx.reshape(B * S, H), layer["wo"], layer["bo"],
                     layer["ln1_g"], layer["ln1_b"], residual=x)
        h = dense(x, layer["w1"], layer["b1"], act="gelu")      # [B*S, I] bf16
        # FFN down projection fused with residual add + LayerNorm
        x = dense_ln(h, layer["w2"], layer["b2"],
                     layer["ln2_g"], layer["ln2_b"], residual=x)

    seq_out = x.reshape(B, S, H)
    # TODO(synk): pooler output is computed by LMBertModel but unused downstream.

    # MLM head on positions [1, 1+max_word_len): dense -> gelu -> LN (fused)
    sel = seq_out[:, 1:1 + M].reshape(B * M, H)
    t = dense_ln(sel, params["cls_w"], params["cls_b"],
                 params["cls_ln_g"], params["cls_ln_b"], act="gelu")
    scores = dense(t, params["dec_w"], params["dec_b"], out_dtype=jnp.float32)
    scores = scores.reshape(B, M, -1)

    # word_scores[b, w] = sum_m scores[b, m, word2bpes_t[m, w]]   (gather + sum)
    idx = jnp.broadcast_to(word2bpes_t[None], (B, M, W))
    word_scores = jnp.take_along_axis(scores, idx, axis=-1).sum(axis=1)

    # TODO(synk): training branch (dropout + gradient-reversal hook + lg_fc MLP)
    # is a training-time autograd construct with no inference-kernel equivalent.
    return {"pred": word_scores}


# ----------------------------------------------------------------------------
if __name__ == "__main__":
    # small synthetic config (H=128 so the lane-dense head-group attention path
    # with hpb*hd == 128 is exercised)
    V, H, I, L, nh = 64, 128, 256, 2, 2
    B, S = 2, 8
    M, W = 4, 16            # max_word_len, num_words
    n_lang = 3
    pad_id = 0

    key = jax.random.PRNGKey(0)
    kp, k1, k2, k3 = jax.random.split(key, 4)
    params = init_params(kp, V, H, I, L, nh, max_pos=S, n_type=2, n_lang=n_lang)

    input_ids = jax.random.randint(k1, (B, S), 1, V)
    input_ids = input_ids.at[:, -2:].set(pad_id)          # trailing padding
    language_ids = jax.random.randint(k2, (B, S), 0, n_lang)
    word2bpes = jax.random.randint(k3, (W, M), 1, V)      # [num_words, max_word_len]
    word2bpes_t = word2bpes.T                             # [max_word_len, num_words]

    out = joint_bert_reverse_dict(params, input_ids, language_ids,
                                  word2bpes_t, pad_id)
    jax.block_until_ready(out["pred"])
    assert out["pred"].shape == (B, W)
    print("KERNEL_OK")
</pallas_src>

<mosaic_0001>
module attributes {stable_mosaic.version = 11 : i64} {
  func.func @_ln_add_kernel(%arg0: i32, %arg1: memref<16x128xf32, #tpu.memory_space<vmem>>, %arg2: memref<16x128xf32, #tpu.memory_space<vmem>>, %arg3: memref<1x128xf32, #tpu.memory_space<vmem>>, %arg4: memref<1x128xf32, #tpu.memory_space<vmem>>, %arg5: memref<16x128xbf16, #tpu.memory_space<vmem>>) attributes {dimension_semantics = [#tpu.dimension_semantics<parallel>], iteration_bounds = array<i64: 1>, scalar_prefetch = 0 : i64, scratch_operands = 0 : i64, tpu.core_type = #tpu.core_type<tc>, window_params = [{transform_indices = @transform_0, window_bounds = array<i64: 16, 128>}, {transform_indices = @transform_1, window_bounds = array<i64: 16, 128>}, {pipeline_mode = #tpu.pipeline_mode<synchronous>, transform_indices = @transform_2, window_bounds = array<i64: 1, 128>}, {pipeline_mode = #tpu.pipeline_mode<synchronous>, transform_indices = @transform_3, window_bounds = array<i64: 1, 128>}, {transform_indices = @transform_4, window_bounds = array<i64: 16, 128>}]} {
    %c0 = arith.constant 0 : index
    %c0_0 = arith.constant 0 : index
    %0 = vector.load %arg1[%c0, %c0_0] : memref<16x128xf32, #tpu.memory_space<vmem>>, vector<16x128xf32>
    %cst = arith.constant dense<0.000000e+00> : vector<16xf32>
    %1 = vector.multi_reduction <add>, %0, %cst [1] : vector<16x128xf32> to vector<16xf32>
    %2 = vector.shape_cast %1 : vector<16xf32> to vector<16x1xf32>
    %cst_1 = arith.constant 1.280000e+02 : f32
    %3 = vector.broadcast %cst_1 : f32 to vector<16x1xf32>
    %4 = arith.divf %2, %3 : vector<16x1xf32>
    %5 = vector.broadcast %4 : vector<16x1xf32> to vector<16x128xf32>
    %6 = arith.subf %0, %5 : vector<16x128xf32>
    %7 = arith.mulf %6, %6 : vector<16x128xf32>
    %cst_2 = arith.constant dense<0.000000e+00> : vector<16xf32>
    %8 = vector.multi_reduction <add>, %7, %cst_2 [1] : vector<16x128xf32> to vector<16xf32>
    %9 = vector.shape_cast %8 : vector<16xf32> to vector<16x1xf32>
    %cst_3 = arith.constant 1.280000e+02 : f32
    %10 = vector.broadcast %cst_3 : f32 to vector<16x1xf32>
    %11 = arith.divf %9, %10 : vector<16x1xf32>
    %cst_4 = arith.constant 9.99999996E-13 : f32
    %12 = vector.broadcast %cst_4 : f32 to vector<16x1xf32>
    %13 = arith.addf %11, %12 : vector<16x1xf32>
    %14 = math.rsqrt %13 : vector<16x1xf32>
    %15 = vector.broadcast %14 : vector<16x1xf32> to vector<16x128xf32>
    %16 = arith.mulf %6, %15 : vector<16x128xf32>
    %c0_5 = arith.constant 0 : index
    %c0_6 = arith.constant 0 : index
    %17 = vector.load %arg3[%c0_5, %c0_6] : memref<1x128xf32, #tpu.memory_space<vmem>>, vector<1x128xf32>
    %18 = vector.broadcast %17 : vector<1x128xf32> to vector<16x128xf32>
    %19 = arith.mulf %16, %18 : vector<16x128xf32>
    %c0_7 = arith.constant 0 : index
    %c0_8 = arith.constant 0 : index
    %20 = vector.load %arg4[%c0_7, %c0_8] : memref<1x128xf32, #tpu.memory_space<vmem>>, vector<1x128xf32>
    %21 = vector.broadcast %20 : vector<1x128xf32> to vector<16x128xf32>
    %22 = arith.addf %19, %21 : vector<16x128xf32>
    %c0_9 = arith.constant 0 : index
    %c0_10 = arith.constant 0 : index
    %23 = vector.load %arg2[%c0_9, %c0_10] : memref<16x128xf32, #tpu.memory_space<vmem>>, vector<16x128xf32>
    %24 = arith.addf %22, %23 : vector<16x128xf32>
    %25 = arith.truncf %24 : vector<16x128xf32> to vector<16x128xbf16>
    %c0_11 = arith.constant 0 : index
    %c0_12 = arith.constant 0 : index
    %26 = vector.load %arg5[%c0_11, %c0_12] : memref<16x128xbf16, #tpu.memory_space<vmem>>, vector<16x128xbf16>
    tpu.vector_store %arg5[%c0_11, %c0_12], %25 {strides = array<i32>} : memref<16x128xbf16, #tpu.memory_space<vmem>>, vector<16x128xbf16>,
    return
  }
  func.func @transform_0(%arg0: i32) -> (i32, i32) {
    %c0_i32 = arith.constant 0 : i32
    %c0_i32_0 = arith.constant 0 : i32
    return %arg0, %c0_i32 : i32, i32
  }
  func.func @transform_1(%arg0: i32) -> (i32, i32) {
    %c0_i32 = arith.constant 0 : i32
    %c0_i32_0 = arith.constant 0 : i32
    return %arg0, %c0_i32 : i32, i32
  }
  func.func @transform_2(%arg0: i32) -> (i32, i32) {
    %c0_i32 = arith.constant 0 : i32
    %c0_i32_0 = arith.constant 0 : i32
    %c0_i32_1 = arith.constant 0 : i32
    return %c0_i32, %c0_i32_0 : i32, i32
  }
  func.func @transform_3(%arg0: i32) -> (i32, i32) {
    %c0_i32 = arith.constant 0 : i32
    %c0_i32_0 = arith.constant 0 : i32
    %c0_i32_1 = arith.constant 0 : i32
    return %c0_i32, %c0_i32_0 : i32, i32
  }
  func.func @transform_4(%arg0: i32) -> (i32, i32) {
    %c0_i32 = arith.constant 0 : i32
    %c0_i32_0 = arith.constant 0 : i32
    return %arg0, %c0_i32 : i32, i32
  }
}

</mosaic_0001>

<bundles_post_ra>
// kernel: tpu_custom_call.1
= control target key start
LH: loop header
LB: loop body
LE: loop exit
PB: predicated region body
PF: predicated region fallthrough
CT: control target
= control target key end

     0   :  { %9 = vsyncpa [#allocation3], 0  ;;  %s286_s0 = inlined_call_operand.hbm [shape: f32[16,128], index: 0, kind: input, shape index: {}]   ;;  %s287_s1 = inlined_call_operand.hbm [shape: f32[16,128], index: 1, kind: input, shape index: {}]   ;;  %s288_s2 = inlined_call_operand.vmem [shape: f32[1,128], index: 2, kind: input, shape index: {}]   ;;  %s289_s3 = inlined_call_operand.vmem [shape: f32[1,128], index: 3, kind: input, shape index: {}]   ;;  %s290_s4 = inlined_call_operand.hbm [shape: bf16[16,128], index: 4, kind: output, shape index: {}]  }
   0x1   :  { %10 = vsyncpa [#allocation6], 0 }
   0x2   :  { %11 = vsyncpa [#allocation4], 0  ;;  %s16_s17 = sshll.u32 %s286_s0, 4  ;;  %s238_s18 = smov [#allocation2]   ;;  %s17_s17 = int_to_ptr.hbm [resolvable:$true] %s16_s17 }
   0x3   :  { %s18_s19 = sshll.u32 %s238_s18, 4  ;;  %s29_s22 = sshll.u32 %s287_s1, 4  ;;  %s19_s19 = int_to_ptr.vmem [resolvable:$true] %s18_s19  ;;  %s30_s22 = int_to_ptr.hbm [resolvable:$true] %s29_s22 }
   0x4   :  { %s239_s23 = smov 128   ;;  %s240_s24 = smov 8  }
   0x5   :  { %24 = dma.hbm_to_vmem [thread:$0]  %s17_s17, 256, %s19_s19, [#allocation3], %s239_s23, %s239_s23, %s240_s24  }
   0x6   :  { %s241_s25 = smov [#allocation5]  }
   0x7   :  { %s31_s26 = sshll.u32 %s241_s25, 4  ;;  %s32_s26 = int_to_ptr.vmem [resolvable:$true] %s31_s26 }
   0x8   :  { %37 = dma.hbm_to_vmem [thread:$0]  %s30_s22, 256, %s32_s26, [#allocation6], %s239_s23, %s239_s23, %s240_s24  }
   0x9   :  { %232 = dma.done.wait [#allocation3], 256  }
   0xa   :  { %233 = vsyncadd [#allocation3], 4294967040 }
   0xb   :  { %234 = dma.done.wait [#allocation6], 256  }
   0xc   :  { %235 = vsyncadd [#allocation6], 4294967040  ;;  %v50_v0 = vld [vmem:[#allocation2] sm:$0xff]  ;;  %v51_v1 = vld [vmem:[#allocation2 + $0x8] sm:$0xff]  ;;  %v242_v2 = vmov 128.0   ;;  %s243_s29 = smov [#allocation7]  }
   0xd   :  { %52 = vadd.xlane.f32.xlu0 %v50_v0  ;;  %154 = vrcp.f32 %v242_v2  ;;  %v152_v34 = vld [vmem:[%s288_s2] ss:$0 sm:$0xff]  ;;  %v111_v44 = vld [vmem:[#allocation5] sm:$0xff]  ;;  %v112_v45 = vld [vmem:[#allocation5 + $0x8] sm:$0xff]  ;;  %s123_s2 = sshll.u32 %s243_s29, 4  ;;  %s125_s6 = sshll.u32 %s290_s4, 4  ;;  %s124_s2 = int_to_ptr.vmem [resolvable:$true] %s123_s2  ;;  %s126_s6 = int_to_ptr.hbm [resolvable:$true] %s125_s6 }
   0xe   :  { %v153_v38 = vld [vmem:[%s289_s3] ss:$0 sm:$0xff]  ;;  %s244_s3 = smov 64   ;;  %s245_s7 = smov 4  }
  0x13   :  { %v155_v3 = vpop.eup %154 }
  0x14   :  { %v57_v4 = vmul.f32 128.0, %v155_v3  ;;  %vm61_vm0 = vweird.f32 %v155_v3 }
  0x15   :  { %54 = vadd.xlane.f32.xlu0 %v51_v1 }
  0x16   :  { %v58_v5 = vsub.f32 1.0, %v57_v4 }
  0x18   :  { %v59_v6 = vmul.f32 %v155_v3, %v58_v5 }
  0x1a   :  { %v60_v7 = vadd.f32 %v155_v3, %v59_v6 }
  0x1c   :  { %v62_v8 = vsel %vm61_vm0, %v155_v3, %v60_v7 }
  0x80   :  { %v53_v9 = vpop.xlane.xlu0 %52 }
  0x81   :  { %v63_v10 = vmul.f32 %v62_v8, %v53_v9 }
  0x83   :  { %v65_v11 = vsub.f32 %v50_v0, %v63_v10 }
  0x85   :  { %v67_v12 = vmul.f32 %v65_v11, %v65_v11 }
  0x87   :  { %69 = vadd.xlane.f32.xlu1 %v67_v12 }
  0x88   :  { %v55_v13 = vpop.xlane.xlu0 %54 }
  0x89   :  { %v64_v14 = vmul.f32 %v62_v8, %v55_v13 }
  0x8b   :  { %v66_v15 = vsub.f32 %v51_v1, %v64_v14 }
  0x8d   :  { %v68_v16 = vmul.f32 %v66_v15, %v66_v15 }
  0x8f   :  { %71 = vadd.xlane.f32.xlu1 %v68_v16 }
  0xfa   :  { %v70_v17 = vpop.xlane.xlu1 %69 }
  0xfb   :  { %v73_v18 = vmul.f32 %v70_v17, %v62_v8 }
  0xfd   :  { %v75_v19 = vadd.f32 1e-12, %v73_v18 }
  0xff   :  { %156 = vrsqrt.f32 %v75_v19  ;;  %vm83_vm2 = vweird.f32 %v75_v19 }
 0x102   :  { %v72_v20 = vpop.xlane.xlu1 %71 }
 0x103   :  { %v74_v21 = vmul.f32 %v72_v20, %v62_v8 }
 0x105   :  { %v157_v22 = vpop.eup %156  ;;  %v76_v23 = vadd.f32 1e-12, %v74_v21 }
 0x106   :  { %v78_v24 = vmul.f32 %v157_v22, %v75_v19  ;;  %vm84_vm1 = vweird.f32 %v157_v22 }
 0x107   :  { %158 = vrsqrt.f32 %v76_v23  ;;  %vm85_vm3 = vmor %vm83_vm2, %vm84_vm1  ;;  %vm93_vm5 = vweird.f32 %v76_v23 }
 0x108   :  { %v79_v25 = vmul.f32 %v157_v22, %v78_v24 }
 0x10a   :  { %v80_v26 = vmul.f32 0.5, %v79_v25 }
 0x10c   :  { %v81_v27 = vsub.f32 1.5, %v80_v26 }
 0x10d   :  { %v159_v28 = vpop.eup %158 }
 0x10e   :  { %v82_v29 = vmul.f32 %v157_v22, %v81_v27  ;;  %v88_v30 = vmul.f32 %v159_v28, %v76_v23  ;;  %vm94_vm4 = vweird.f32 %v159_v28 }
 0x10f   :  { %vm95_vm6 = vmor %vm93_vm5, %vm94_vm4 }
 0x110   :  { %v86_v31 = vsel %vm85_vm3, %v157_v22, %v82_v29  ;;  %v89_v32 = vmul.f32 %v159_v28, %v88_v30 }
 0x111   :  { %v97_v35 = vmul.f32 %v86_v31, %v65_v11 }
 0x112   :  { %v90_v33 = vmul.f32 0.5, %v89_v32 }
 0x113   :  { %v103_v39 = vmul.f32 %v152_v34, %v97_v35 }
 0x114   :  { %v91_v36 = vsub.f32 1.5, %v90_v33 }
 0x115   :  { %v109_v42 = vadd.f32 %v153_v38, %v103_v39 }
 0x116   :  { %v92_v37 = vmul.f32 %v159_v28, %v91_v36 }
 0x117   :  { %v113_v47 = vadd.f32 %v111_v44, %v109_v42 }
 0x118   :  { %v96_v40 = vsel %vm95_vm6, %v159_v28, %v92_v37 }
 0x119   :  { %v98_v41 = vmul.f32 %v96_v40, %v66_v15 }
 0x11b   :  { %v104_v43 = vmul.f32 %v152_v34, %v98_v41 }
 0x11d   :  { %v110_v46 = vadd.f32 %v153_v38, %v104_v43 }
 0x11f   :  { %v114_v48 = vadd.f32 %v112_v45, %v110_v46 }
 0x121   :  { %v142_v49 = vpack.c.bf16 %v114_v48, %v113_v47 }
 0x123   :  { %143 = vst [vmem:[#allocation7] sm:$0xff] %v142_v49  }
 0x124   :  { %131 = dma.vmem_to_hbm [thread:$0]  %s124_s2, 128, %s126_s6, [#allocation4], %s244_s3, %s244_s3, %s245_s7  }
 0x125   :  { %236 = dma.done.wait [#allocation4], 128  }
 0x126   :  { %237 = vsyncadd [#allocation4], 4294967168 }
 0x127   :  { %136 = vsyncpa [#allocation3], 1 }
 0x128   :  { %137 = vsyncpa [#allocation6], 1 }
 0x129   :  { %138 = vsyncpa [#allocation4], 1 }

</bundles_post_ra>
